<compile_context>
chip_gen: v7x
topology: tpu7x:2x2x1
jax: 0.10.0
libtpu: 0.0.40
codegen_flags: <defaults>
</compile_context>

<pallas_src>
import functools

import jax
import jax.numpy as jnp
from jax.experimental import pallas as pl
from jax.experimental.pallas import tpu as pltpu

LANES = 128
SUBLANES = 8
DEFAULT_TILE_ROWS = 4096   # 4096x128 f32 = 2 MiB/tile; 2 inputs x 2 bufs = 8 MiB
CHUNK_ROWS = 512           # inner compute granularity (keeps live temps ~0.25 MiB)


def _cdiv(a, b):
    return -(-a // b)


def _round_up(a, b):
    return _cdiv(a, b) * b


def _num_shards_for_chip():
    # The leading "parallel" grid axis only buys anything on megacore parts
    # (2 TensorCores behind one device, e.g. v7x).  On single-TC v5e/v6e a
    # second shard just serializes and can add a redundant dummy-tile DMA.
    try:
        kind = jax.devices()[0].device_kind.lower()
    except Exception:
        return 1
    return 2 if "v7" in kind else 1


def _bce_elem(x, t, binary_targets):
    # binary_cross_entropy elementwise term with torch's log clamp at -100.
    if binary_targets:
        p = jnp.where(t >= 0.5, x, 1.0 - x)
        return -jnp.maximum(jnp.log(p), -100.0)
    log_x = jnp.maximum(jnp.log(x), -100.0)
    log_1mx = jnp.maximum(jnp.log(1.0 - x), -100.0)
    return -(t * log_x + (1.0 - t) * log_1mx)


def _focal_bce_partial_kernel(x_ref, t_ref, o_ref, *, tile_rows, chunk_rows,
                              blocks_per_shard, num_blocks, rows_valid,
                              binary_targets):
    p = pl.program_id(0)   # parallel shard
    i = pl.program_id(1)   # reduction step within shard

    @pl.when(i == 0)
    def _():
        o_ref[...] = jnp.zeros_like(o_ref)

    b = p * blocks_per_shard + i               # logical block index
    n_chunks = tile_rows // chunk_rows

    def chunk_bce(c):
        r0 = pl.multiple_of(c * chunk_rows, chunk_rows)
        x = x_ref[pl.ds(r0, chunk_rows), :].astype(jnp.float32)
        t = t_ref[pl.ds(r0, chunk_rows), :].astype(jnp.float32)
        return r0, _bce_elem(x, t, binary_targets)

    def reduce_to_vreg(bce, acc):
        # Pure VPU adds down to a vreg-shaped (8,128) partial.
        return acc + bce.reshape(chunk_rows // SUBLANES, SUBLANES, LANES).sum(axis=0)

    def fast_body(c, acc):
        _, bce = chunk_bce(c)
        return reduce_to_vreg(bce, acc)

    def masked_body(c, acc):
        # Row-only mask: the wrapper's zero-pad rows contribute exactly 0 to
        # BCE, so only rows past the (padded) row count need discarding
        # (ragged last block + dummy shard iterations).  Keep select
        # semantics (jnp.where) — OOB rows may contain NaN-producing garbage.
        r0, bce = chunk_bce(c)
        row_ids = jax.lax.broadcasted_iota(jnp.int32, (chunk_rows, LANES), 0)
        global_rows = b * tile_rows + r0 + row_ids   # int32-safe up to ~2^31 rows
        bce = jnp.where(global_rows < rows_valid, bce, 0.0)
        return reduce_to_vreg(bce, acc)

    zero = jnp.zeros((SUBLANES, LANES), jnp.float32)

    @pl.when(b < num_blocks - 1)
    def _():   # interior blocks: lean unmasked fast path
        acc = jax.lax.fori_loop(0, n_chunks, fast_body, zero, unroll=True)
        o_ref[...] += acc[None, :, :]

    @pl.when(b >= num_blocks - 1)
    def _():   # last logical block + clamped dummy iterations
        acc = jax.lax.fori_loop(0, n_chunks, masked_body, zero, unroll=True)
        o_ref[...] += acc[None, :, :]


def focal_loss(inputs, targets, gamma=1.0, alpha=1.0, *,
               assume_binary_targets=False):
    """Pallas FocalLoss forward.

    inputs/targets: same shape, inputs in (0,1).  Pass them in their native
    dtype (bf16 inputs / bool or int8 targets are upcast in-kernel); avoid a
    host-side astype to f32 — the kernel is HBM-bandwidth-bound.
    """
    x = inputs.reshape(-1)          # native dtype; the kernel upcasts on load
    t = targets.reshape(-1)
    n_total = x.shape[0]

    # Lane alignment: pad only when numel is not a multiple of 128.  Padded
    # elements (x=0, t=0) contribute exactly 0 to BCE via the -100 clamp.
    rem = n_total % LANES
    if rem:
        pad = LANES - rem
        x = jnp.pad(x, (0, pad))
        t = jnp.pad(t, (0, pad))

    rows = x.shape[0] // LANES
    x2 = x.reshape(rows, LANES)     # pure bitcast reshape, no HBM copy
    t2 = t.reshape(rows, LANES)

    if rows >= DEFAULT_TILE_ROWS:
        tile_rows = DEFAULT_TILE_ROWS
        chunk_rows = CHUNK_ROWS
    else:
        tile_rows = _round_up(rows, SUBLANES)
        chunk_rows = tile_rows

    num_blocks = _cdiv(rows, tile_rows)
    num_shards = _num_shards_for_chip() if num_blocks >= 2 else 1
    blocks_per_shard = _cdiv(num_blocks, num_shards)

    def in_map(p, i):
        # Clamp so dummy trailing iterations of the last shard never DMA out
        # of range; their contribution is masked to zero in-kernel.
        return (jnp.minimum(p * blocks_per_shard + i, num_blocks - 1), 0)

    kernel = functools.partial(
        _focal_bce_partial_kernel,
        tile_rows=tile_rows,
        chunk_rows=chunk_rows,
        blocks_per_shard=blocks_per_shard,
        num_blocks=num_blocks,
        rows_valid=rows,
        binary_targets=assume_binary_targets,
    )

    # TODO(synk): n_total/num_blocks are baked as Python ints, so a new numel
    # triggers a recompile; an SMEM scalar-prefetch arg would avoid that.
    bytes_accessed = (x2.size * x2.dtype.itemsize
                      + t2.size * t2.dtype.itemsize
                      + num_shards * SUBLANES * LANES * 4)
    cost = pl.CostEstimate(
        flops=8 * n_total,
        transcendentals=(1 if assume_binary_targets else 2) * n_total,
        bytes_accessed=bytes_accessed,
    )

    partial_sums = pl.pallas_call(
        kernel,
        out_shape=jax.ShapeDtypeStruct((num_shards, SUBLANES, LANES), jnp.float32),
        grid_spec=pltpu.PrefetchScalarGridSpec(
            num_scalar_prefetch=0,
            grid=(num_shards, blocks_per_shard),
            in_specs=[
                pl.BlockSpec((tile_rows, LANES), in_map),
                pl.BlockSpec((tile_rows, LANES), in_map),
            ],
            out_specs=pl.BlockSpec((1, SUBLANES, LANES), lambda p, i: (p, 0, 0)),
        ),
        compiler_params=pltpu.CompilerParams(
            dimension_semantics=("parallel", "arbitrary"),
            vmem_limit_bytes=32 * 1024 * 1024,   # 8 MiB tiles + small temps; v7x-safe
        ),
        cost_estimate=cost,
    )(x2, t2)

    # Tiny scalar epilogue: combine per-shard partials, mean, focal transform.
    bce = jnp.sum(partial_sums) / jnp.float32(n_total)
    bce_exp = jnp.exp(-bce)
    return jnp.float32(alpha) * (1.0 - bce_exp) ** jnp.float32(gamma) * bce


def focal_loss_ref(inputs, targets, gamma=1.0, alpha=1.0):
    x = inputs.reshape(-1).astype(jnp.float32)
    t = targets.reshape(-1).astype(jnp.float32)
    log_x = jnp.maximum(jnp.log(x), -100.0)
    log_1mx = jnp.maximum(jnp.log(1.0 - x), -100.0)
    bce = jnp.mean(-(t * log_x + (1.0 - t) * log_1mx))
    return alpha * (1.0 - jnp.exp(-bce)) ** gamma * bce


if __name__ == "__main__":
    key = jax.random.PRNGKey(0)
    k1, k2, k3, k4 = jax.random.split(key, 4)

    # NCHW-shaped inputs as the module expects (e.g. from a sigmoid head).
    B, C, H, W = 2, 4, 16, 16
    logits = jax.random.normal(k1, (B, C, H, W), dtype=jnp.float32)
    inputs = jax.nn.sigmoid(logits)                       # values in (0, 1)
    targets = jax.random.bernoulli(k2, 0.5, (B, C, H, W)).astype(jnp.float32)

    loss = focal_loss(inputs, targets, gamma=1.0, alpha=1.0)
    loss = jax.block_until_ready(loss)
    ref = focal_loss_ref(inputs, targets, gamma=1.0, alpha=1.0)
    assert jnp.allclose(loss, ref, rtol=1e-5, atol=1e-6), (loss, ref)

    # Second check: ragged numel (not a multiple of 128) + non-default params,
    # exercising the pad + row-mask path.
    shp = (2, 3, 17, 19)
    logits2 = jax.random.normal(k3, shp, dtype=jnp.float32)
    inputs2 = jax.nn.sigmoid(logits2)
    targets2 = jax.random.bernoulli(k4, 0.5, shp).astype(jnp.float32)
    loss2 = jax.block_until_ready(focal_loss(inputs2, targets2, gamma=2.0, alpha=0.25))
    ref2 = focal_loss_ref(inputs2, targets2, gamma=2.0, alpha=0.25)
    assert jnp.allclose(loss2, ref2, rtol=1e-5, atol=1e-6), (loss2, ref2)

    print("KERNEL_OK")
</pallas_src>

<mosaic_0001>
module attributes {stable_mosaic.version = 11 : i64} {
  func.func @_focal_bce_partial_kernel(%arg0: i32, %arg1: i32, %arg2: memref<16x128xf32, #tpu.memory_space<vmem>>, %arg3: memref<16x128xf32, #tpu.memory_space<vmem>>, %arg4: memref<1x8x128xf32, #tpu.memory_space<vmem>>) attributes {dimension_semantics = [#tpu.dimension_semantics<parallel>, #tpu.dimension_semantics<arbitrary>], iteration_bounds = array<i64: 1, 1>, scalar_prefetch = 0 : i64, scratch_operands = 0 : i64, tpu.core_type = #tpu.core_type<tc>, window_params = [{transform_indices = @transform_0, window_bounds = array<i64: 16, 128>}, {transform_indices = @transform_1, window_bounds = array<i64: 16, 128>}, {transform_indices = @transform_2, window_bounds = array<i64: 1, 8, 128>}]} {
    %c0_i32 = arith.constant 0 : i32
    %0 = arith.cmpi eq, %arg1, %c0_i32 : i32
    %1 = arith.extui %0 : i1 to i32
    %c0_i32_0 = arith.constant 0 : i32
    %2 = arith.cmpi ne, %1, %c0_i32_0 : i32
    scf.if %2 {
      %cst_5 = arith.constant 0.000000e+00 : f32
      %12 = vector.broadcast %cst_5 : f32 to vector<1x8x128xf32>
      %c0 = arith.constant 0 : index
      %c0_6 = arith.constant 0 : index
      %c0_7 = arith.constant 0 : index
      %13 = vector.load %arg4[%c0, %c0_6, %c0_7] : memref<1x8x128xf32, #tpu.memory_space<vmem>>, vector<1x8x128xf32>
      tpu.vector_store %arg4[%c0, %c0_6, %c0_7], %12 {strides = array<i32>} : memref<1x8x128xf32, #tpu.memory_space<vmem>>, vector<1x8x128xf32>,
    } else {
    }
    %c1_i32 = arith.constant 1 : i32
    %3 = arith.muli %arg0, %c1_i32 : i32
    %4 = arith.addi %3, %arg1 : i32
    %cst = arith.constant 0.000000e+00 : f32
    %5 = vector.broadcast %cst : f32 to vector<8x128xf32>
    %c0_i32_1 = arith.constant 0 : i32
    %6 = arith.cmpi slt, %4, %c0_i32_1 : i32
    %7 = arith.extui %6 : i1 to i32
    %c0_i32_2 = arith.constant 0 : i32
    %8 = arith.cmpi ne, %7, %c0_i32_2 : i32
    scf.if %8 {
      %c0_i32_5 = arith.constant 0 : i32
      %c16_i32 = arith.constant 16 : i32
      %12 = arith.muli %c0_i32_5, %c16_i32 : i32
      %13 = tpu.assume_multiple %12, 16 : i32
      %14 = arith.index_cast %13 : i32 to index
      %c0 = arith.constant 0 : index
      %15 = vector.load %arg2[%14, %c0] : memref<16x128xf32, #tpu.memory_space<vmem>>, vector<16x128xf32>
      %16 = arith.index_cast %13 : i32 to index
      %c0_6 = arith.constant 0 : index
      %17 = vector.load %arg3[%16, %c0_6] : memref<16x128xf32, #tpu.memory_space<vmem>>, vector<16x128xf32>
      %18 = math.log %15 : vector<16x128xf32>
      %cst_7 = arith.constant -1.000000e+02 : f32
      %19 = vector.broadcast %cst_7 : f32 to vector<16x128xf32>
      %20 = arith.maximumf %18, %19 : vector<16x128xf32>
      %cst_8 = arith.constant 1.000000e+00 : f32
      %21 = vector.broadcast %cst_8 : f32 to vector<16x128xf32>
      %22 = arith.subf %21, %15 : vector<16x128xf32>
      %23 = math.log %22 : vector<16x128xf32>
      %cst_9 = arith.constant -1.000000e+02 : f32
      %24 = vector.broadcast %cst_9 : f32 to vector<16x128xf32>
      %25 = arith.maximumf %23, %24 : vector<16x128xf32>
      %26 = arith.mulf %17, %20 : vector<16x128xf32>
      %cst_10 = arith.constant 1.000000e+00 : f32
      %27 = vector.broadcast %cst_10 : f32 to vector<16x128xf32>
      %28 = arith.subf %27, %17 : vector<16x128xf32>
      %29 = arith.mulf %28, %25 : vector<16x128xf32>
      %30 = arith.addf %26, %29 : vector<16x128xf32>
      %cst_11 = arith.constant 0.000000e+00 : f32
      %31 = vector.broadcast %cst_11 : f32 to vector<16x128xf32>
      %32 = arith.subf %31, %30 : vector<16x128xf32>
      %33 = vector.shape_cast %32 : vector<16x128xf32> to vector<2x8x128xf32>
      %cst_12 = arith.constant dense<0.000000e+00> : vector<8x128xf32>
      %34 = vector.multi_reduction <add>, %33, %cst_12 [0] : vector<2x8x128xf32> to vector<8x128xf32>
      %35 = arith.addf %5, %34 : vector<8x128xf32>
      %c1_i32_13 = arith.constant 1 : i32
      %c0_14 = arith.constant 0 : index
      %c0_15 = arith.constant 0 : index
      %c0_16 = arith.constant 0 : index
      %36 = vector.load %arg4[%c0_14, %c0_15, %c0_16] : memref<1x8x128xf32, #tpu.memory_space<vmem>>, vector<1x8x128xf32>
      %37 = vector.shape_cast %35 : vector<8x128xf32> to vector<1x8x128xf32>
      %38 = arith.addf %36, %37 : vector<1x8x128xf32>
      %c0_17 = arith.constant 0 : index
      %c0_18 = arith.constant 0 : index
      %c0_19 = arith.constant 0 : index
      %39 = vector.load %arg4[%c0_17, %c0_18, %c0_19] : memref<1x8x128xf32, #tpu.memory_space<vmem>>, vector<1x8x128xf32>
      tpu.vector_store %arg4[%c0_17, %c0_18, %c0_19], %38 {strides = array<i32>} : memref<1x8x128xf32, #tpu.memory_space<vmem>>, vector<1x8x128xf32>,
    } else {
    }
    %c0_i32_3 = arith.constant 0 : i32
    %9 = arith.cmpi sge, %4, %c0_i32_3 : i32
    %10 = arith.extui %9 : i1 to i32
    %c0_i32_4 = arith.constant 0 : i32
    %11 = arith.cmpi ne, %10, %c0_i32_4 : i32
    scf.if %11 {
      %c0_i32_5 = arith.constant 0 : i32
      %c16_i32 = arith.constant 16 : i32
      %12 = arith.muli %c0_i32_5, %c16_i32 : i32
      %13 = tpu.assume_multiple %12, 16 : i32
      %14 = arith.index_cast %13 : i32 to index
      %c0 = arith.constant 0 : index
      %15 = vector.load %arg2[%14, %c0] : memref<16x128xf32, #tpu.memory_space<vmem>>, vector<16x128xf32>
      %16 = arith.index_cast %13 : i32 to index
      %c0_6 = arith.constant 0 : index
      %17 = vector.load %arg3[%16, %c0_6] : memref<16x128xf32, #tpu.memory_space<vmem>>, vector<16x128xf32>
      %18 = math.log %15 : vector<16x128xf32>
      %cst_7 = arith.constant -1.000000e+02 : f32
      %19 = vector.broadcast %cst_7 : f32 to vector<16x128xf32>
      %20 = arith.maximumf %18, %19 : vector<16x128xf32>
      %cst_8 = arith.constant 1.000000e+00 : f32
      %21 = vector.broadcast %cst_8 : f32 to vector<16x128xf32>
      %22 = arith.subf %21, %15 : vector<16x128xf32>
      %23 = math.log %22 : vector<16x128xf32>
      %cst_9 = arith.constant -1.000000e+02 : f32
      %24 = vector.broadcast %cst_9 : f32 to vector<16x128xf32>
      %25 = arith.maximumf %23, %24 : vector<16x128xf32>
      %26 = arith.mulf %17, %20 : vector<16x128xf32>
      %cst_10 = arith.constant 1.000000e+00 : f32
      %27 = vector.broadcast %cst_10 : f32 to vector<16x128xf32>
      %28 = arith.subf %27, %17 : vector<16x128xf32>
      %29 = arith.mulf %28, %25 : vector<16x128xf32>
      %30 = arith.addf %26, %29 : vector<16x128xf32>
      %cst_11 = arith.constant 0.000000e+00 : f32
      %31 = vector.broadcast %cst_11 : f32 to vector<16x128xf32>
      %32 = arith.subf %31, %30 : vector<16x128xf32>
      %33 = tpu.iota {dimensions = array<i32: 0>} : vector<16x128xi32>
      %c16_i32_12 = arith.constant 16 : i32
      %34 = arith.muli %4, %c16_i32_12 : i32
      %35 = arith.addi %34, %13 : i32
      %36 = vector.broadcast %35 : i32 to vector<16x128xi32>
      %37 = arith.addi %36, %33 : vector<16x128xi32>
      %c16_i32_13 = arith.constant 16 : i32
      %38 = vector.broadcast %c16_i32_13 : i32 to vector<16x128xi32>
      %39 = arith.cmpi slt, %37, %38 : vector<16x128xi32>
      %cst_14 = arith.constant 0.000000e+00 : f32
      %40 = vector.broadcast %cst_14 : f32 to vector<16x128xf32>
      %41 = arith.select %39, %32, %40 : vector<16x128xi1>, vector<16x128xf32>
      %42 = vector.shape_cast %41 : vector<16x128xf32> to vector<2x8x128xf32>
      %cst_15 = arith.constant dense<0.000000e+00> : vector<8x128xf32>
      %43 = vector.multi_reduction <add>, %42, %cst_15 [0] : vector<2x8x128xf32> to vector<8x128xf32>
      %44 = arith.addf %5, %43 : vector<8x128xf32>
      %c1_i32_16 = arith.constant 1 : i32
      %c0_17 = arith.constant 0 : index
      %c0_18 = arith.constant 0 : index
      %c0_19 = arith.constant 0 : index
      %45 = vector.load %arg4[%c0_17, %c0_18, %c0_19] : memref<1x8x128xf32, #tpu.memory_space<vmem>>, vector<1x8x128xf32>
      %46 = vector.shape_cast %44 : vector<8x128xf32> to vector<1x8x128xf32>
      %47 = arith.addf %45, %46 : vector<1x8x128xf32>
      %c0_20 = arith.constant 0 : index
      %c0_21 = arith.constant 0 : index
      %c0_22 = arith.constant 0 : index
      %48 = vector.load %arg4[%c0_20, %c0_21, %c0_22] : memref<1x8x128xf32, #tpu.memory_space<vmem>>, vector<1x8x128xf32>
      tpu.vector_store %arg4[%c0_20, %c0_21, %c0_22], %47 {strides = array<i32>} : memref<1x8x128xf32, #tpu.memory_space<vmem>>, vector<1x8x128xf32>,
    } else {
    }
    return
  }
  func.func @transform_0(%arg0: i32, %arg1: i32) -> (i32, i32) {
    %c1_i32 = arith.constant 1 : i32
    %0 = arith.muli %arg0, %c1_i32 : i32
    %1 = arith.addi %0, %arg1 : i32
    %c0_i32 = arith.constant 0 : i32
    %2 = arith.minsi %1, %c0_i32 : i32
    %c0_i32_0 = arith.constant 0 : i32
    %c0_i32_1 = arith.constant 0 : i32
    return %2, %c0_i32_0 : i32, i32
  }
  func.func @transform_1(%arg0: i32, %arg1: i32) -> (i32, i32) {
    %c1_i32 = arith.constant 1 : i32
    %0 = arith.muli %arg0, %c1_i32 : i32
    %1 = arith.addi %0, %arg1 : i32
    %c0_i32 = arith.constant 0 : i32
    %2 = arith.minsi %1, %c0_i32 : i32
    %c0_i32_0 = arith.constant 0 : i32
    %c0_i32_1 = arith.constant 0 : i32
    return %2, %c0_i32_0 : i32, i32
  }
  func.func @transform_2(%arg0: i32, %arg1: i32) -> (i32, i32, i32) {
    %c0_i32 = arith.constant 0 : i32
    %c0_i32_0 = arith.constant 0 : i32
    %c0_i32_1 = arith.constant 0 : i32
    return %arg0, %c0_i32, %c0_i32_0 : i32, i32, i32
  }
}

</mosaic_0001>

<bundles_post_ra>
// kernel: tpu_custom_call.1
= control target key start
LH: loop header
LB: loop body
LE: loop exit
PB: predicated region body
PF: predicated region fallthrough
CT: control target
= control target key end

     0   :  { %7 = vsyncpa [#allocation3], 0  ;;  %s314_s0 = inlined_call_operand.hbm [shape: f32[16,128], index: 0, kind: input, shape index: {}]   ;;  %s315_s1 = inlined_call_operand.hbm [shape: f32[16,128], index: 1, kind: input, shape index: {}]   ;;  %s316_s2 = inlined_call_operand.hbm [shape: f32[1,8,128], index: 2, kind: output, shape index: {}]  }
   0x1   :  { %8 = vsyncpa [#allocation6], 0 }
   0x2   :  { %9 = vsyncpa [#allocation4], 0  ;;  %s258_s9 = smov [#allocation2]   ;;  %s186_s13 = scalar_lea.hbm %s314_s0, 256 }
   0x3   :  { %s21_s10 = sshll.u32 %s258_s9, 4  ;;  %p187_p0 = scmp.ne.s32.totalorder %s314_s0, %s186_s13  ;;  %s22_s10 = int_to_ptr.vmem [resolvable:$true] %s21_s10 }
   0x4   :  { %p190_p1 = scmp.lt.u32.totalorder %s186_s13, %s314_s0 }
   0x6   :  { %p192_p2 = pnand %p190_p1, %p187_p0 }
   0x8   :  { %195 = shalt.err (!%p192_p2)
}
   0x9   :  { %s196_s18 = scalar_lea.vmem %s22_s10, 256  ;;  %p201_p4 = scmp.lt.s32.totalorder %s22_s10, %s22_s10 }
   0xa   :  { %p197_p3 = scmp.ne.s32.totalorder %s22_s10, %s196_s18  ;;  %p202_p5 = scmp.lt.s32.totalorder %s196_s18, %s196_s18 }
   0xc   :  { %p203_p6 = por %p202_p5, %p201_p4 }
   0xe   :  { %p204_p7 = pnand %p203_p6, %p197_p3 }
  0x10   :  { %207 = shalt.err (!%p204_p7)
}
  0x11   :  { %s259_s19 = smov 128   ;;  %s260_s20 = smov 8  }
  0x12   :  { %27 = dma.hbm_to_vmem [thread:$0]  %s314_s0, 256, %s22_s10, [#allocation3], %s259_s19, %s259_s19, %s260_s20  }
  0x13   :  { %s261_s23 = smov [#allocation5]   ;;  %s208_s27 = scalar_lea.hbm %s315_s1, 256 }
  0x14   :  { %s39_s24 = sshll.u32 %s261_s23, 4  ;;  %p209_p8 = scmp.ne.s32.totalorder %s315_s1, %s208_s27  ;;  %s40_s24 = int_to_ptr.vmem [resolvable:$true] %s39_s24 }
  0x15   :  { %p212_p9 = scmp.lt.u32.totalorder %s208_s27, %s315_s1 }
  0x17   :  { %p214_p10 = pnand %p212_p9, %p209_p8 }
  0x19   :  { %217 = shalt.err (!%p214_p10)
}
  0x1a   :  { %s218_s4 = scalar_lea.vmem %s40_s24, 256  ;;  %p223_p12 = scmp.lt.s32.totalorder %s40_s24, %s40_s24 }
  0x1b   :  { %p219_p11 = scmp.ne.s32.totalorder %s40_s24, %s218_s4  ;;  %p224_p13 = scmp.lt.s32.totalorder %s218_s4, %s218_s4 }
  0x1d   :  { %p225_p0 = por %p224_p13, %p223_p12 }
  0x1f   :  { %p226_p1 = pnand %p225_p0, %p219_p11 }
  0x21   :  { %229 = shalt.err (!%p226_p1)
}
  0x22   :  { %45 = dma.hbm_to_vmem [thread:$0]  %s315_s1, 256, %s40_s24, [#allocation6], %s259_s19, %s259_s19, %s260_s20  }
  0x23   :  { %252 = dma.done.wait [#allocation3], 256  }
  0x24   :  { %253 = vsyncadd [#allocation3], 4294967040 }
  0x25   :  { %254 = dma.done.wait [#allocation6], 256  }
  0x26   :  { %255 = vsyncadd [#allocation6], 4294967040  ;;  %v107_v0 = vld [vmem:[#allocation2] sm:$0xff]  ;;  %v108_v1 = vld [vmem:[#allocation2 + $0x8] sm:$0xff]  ;;  %s262_s1 = smov [#allocation7]  }
  0x27   :  { %178 = vlog2.f32 %v107_v0  ;;  %v117_v2 = vsub.f32 1.0, %v107_v0  ;;  %v118_v3 = vsub.f32 1.0, %v108_v1  ;;  %v109_v5 = vld [vmem:[#allocation5] sm:$0xff]  ;;  %v110_v7 = vld [vmem:[#allocation5 + $0x8] sm:$0xff]  ;;  %s158_s6 = sshll.u32 %s262_s1, 4  ;;  %s159_s6 = int_to_ptr.vmem [resolvable:$true] %s158_s6 }
  0x28   :  { %180 = vlog2.f32 %v108_v1  ;;  %v127_v14 = vsub.f32 1.0, %v109_v5  ;;  %v128_v17 = vsub.f32 1.0, %v110_v7  ;;  %s230_s7 = scalar_lea.vmem %s159_s6, 128  ;;  %p235_p3 = scmp.lt.s32.totalorder %s159_s6, %s159_s6 }
  0x29   :  { %182 = vlog2.f32 %v117_v2  ;;  %p231_p2 = scmp.ne.s32.totalorder %s159_s6, %s230_s7  ;;  %p236_p4 = scmp.lt.s32.totalorder %s230_s7, %s230_s7 }
  0x2a   :  { %184 = vlog2.f32 %v118_v3 }
  0x2b   :  { %p237_p5 = por %p236_p4, %p235_p3 }
  0x2d   :  { %p238_p6 = pnand %p237_p5, %p231_p2 }
  0x31   :  { %v179_v4 = vpop.eup %178 }
  0x32   :  { %v181_v6 = vpop.eup %180  ;;  %v112_v8 = vmul.f32 0.6931472, %v179_v4 }
  0x33   :  { %v183_v9 = vpop.eup %182  ;;  %v114_v10 = vmul.f32 0.6931472, %v181_v6 }
  0x34   :  { %v185_v11 = vpop.eup %184  ;;  %v115_v12 = vmax.f32 %v112_v8, -100.0  ;;  %v120_v13 = vmul.f32 0.6931472, %v183_v9 }
  0x35   :  { %v116_v15 = vmax.f32 %v114_v10, -100.0  ;;  %v122_v16 = vmul.f32 0.6931472, %v185_v11 }
  0x36   :  { %v123_v18 = vmax.f32 %v120_v13, -100.0  ;;  %v125_v19 = vmul.f32 %v115_v12, %v109_v5 }
  0x37   :  { %v124_v20 = vmax.f32 %v122_v16, -100.0  ;;  %v126_v21 = vmul.f32 %v116_v15, %v110_v7 }
  0x38   :  { %v129_v22 = vmul.f32 %v127_v14, %v123_v18 }
  0x39   :  { %v130_v23 = vmul.f32 %v128_v17, %v124_v20 }
  0x3a   :  { %v131_v24 = vadd.f32 %v129_v22, %v125_v19 }
  0x3b   :  { %v132_v25 = vadd.f32 %v130_v23, %v126_v21 }
  0x3c   :  { %v133_v26 = vsub.f32 0.0, %v131_v24 }
  0x3d   :  { %v134_v27 = vsub.f32 0.0, %v132_v25 }
  0x3f   :  { %v147_v28 = vadd.f32 %v134_v27, %v133_v26 }
  0x41   :  { %151 = vst [vmem:[#allocation7] sm:$0xff] %v147_v28 }
  0x42   :  { %241 = shalt.err (!%p238_p6)
}
  0x43   :  { %s242_s10 = scalar_lea.hbm %s316_s2, 128 }
  0x44   :  { %p243_p7 = scmp.ne.s32.totalorder %s316_s2, %s242_s10  ;;  %p246_p8 = scmp.lt.u32.totalorder %s242_s10, %s316_s2 }
  0x46   :  { %p248_p9 = pnand %p246_p8, %p243_p7 }
  0x48   :  { %251 = shalt.err (!%p248_p9)
}
  0x49   :  { %161 = dma.vmem_to_hbm [thread:$0]  %s159_s6, 128, %s316_s2, [#allocation4]  }
  0x4a   :  { %256 = dma.done.wait [#allocation4], 128  }
  0x4b   :  { %257 = vsyncadd [#allocation4], 4294967168 }
  0x4c   :  { %165 = vsyncpa [#allocation3], 1 }
  0x4d   :  { %166 = vsyncpa [#allocation6], 1 }
  0x4e   :  { %167 = vsyncpa [#allocation4], 1 }

</bundles_post_ra>
